<compile_context>
chip_gen: v7x
topology: tpu7x:2x2x1
jax: 0.10.0
libtpu: 0.0.40
codegen_flags: <defaults>
</compile_context>

<pallas_src>
import functools

import jax
import jax.numpy as jnp
from jax.experimental import pallas as pl
from jax.experimental.pallas import tpu as pltpu


def _round_up(x, m):
    return (x + m - 1) // m * m


# ----------------------------------------------------------------------------
# Pallas kernel 1: tiled bf16 matmul with fused per-column affine (+ReLU) epilogue
# ----------------------------------------------------------------------------
def _matmul_kernel(a_ref, b_ref, s_ref, t_ref, o_ref, acc_ref, *, relu):
    @pl.when(pl.program_id(2) == 0)
    def _():
        acc_ref[...] = jnp.zeros_like(acc_ref)

    acc_ref[...] += jnp.dot(a_ref[...], b_ref[...],
                            preferred_element_type=jnp.float32)

    @pl.when(pl.program_id(2) == pl.num_programs(2) - 1)
    def _():
        # Fused conv epilogue: bias / folded BN is a per-output-channel affine.
        y = acc_ref[...] * s_ref[...] + t_ref[...]
        if relu:
            y = jnp.maximum(y, 0.0)
        o_ref[...] = y.astype(o_ref.dtype)


def pallas_matmul_fused(a, b, scale, shift, relu=False):
    """a: (M, K), b: (K, N) [bf16 weights], scale/shift: (N,) f32.

    Returns f32 (M, N) = relu?((a @ b) * scale + shift)."""
    M, K = a.shape
    K2, N = b.shape
    assert K == K2

    # --- tile selection (bf16 operands, f32 accumulate) -----------------------
    # tn = 128 maps 1:1 onto v5e's 128-wide MXU arrays and yields >= 2 parallel
    # N blocks on the wider layers so both v7x TensorCores get work.
    Mp0 = _round_up(M, 8)
    if Mp0 <= 256:
        Mp, tm = Mp0, Mp0
    else:
        tm = 256
        Mp = _round_up(M, tm)
    Np = _round_up(N, 128)
    tn = 128
    Kp0 = _round_up(K, 128)
    if Kp0 <= 2048:
        Kp, tk = Kp0, Kp0
    else:
        tk = 1024
        Kp = _round_up(K, tk)

    a_bf = a.astype(jnp.bfloat16)
    b_bf = b.astype(jnp.bfloat16)
    if (Mp, Kp) != (M, K):
        a_bf = jnp.zeros((Mp, Kp), jnp.bfloat16).at[:M, :K].set(a_bf)
    if (Kp, Np) != (K, N):
        b_bf = jnp.zeros((Kp, Np), jnp.bfloat16).at[:K, :N].set(b_bf)
    s_p = scale.astype(jnp.float32).reshape(1, N)
    t_p = shift.astype(jnp.float32).reshape(1, N)
    if Np != N:
        s_p = jnp.zeros((1, Np), jnp.float32).at[:, :N].set(s_p)
        t_p = jnp.zeros((1, Np), jnp.float32).at[:, :N].set(t_p)

    # VMEM use: double-buffered A/B/scale/shift/out blocks + f32 accumulator.
    vmem_bytes = (2 * (tm * tk * 2 + tk * tn * 2 + 2 * tn * 4 + tm * tn * 4)
                  + tm * tn * 4)
    cost = pl.CostEstimate(
        flops=2 * Mp * Np * Kp,
        transcendentals=0,
        bytes_accessed=Mp * Kp * 2 + Kp * Np * 2 + Mp * Np * 4 + 2 * Np * 4)

    out = pl.pallas_call(
        functools.partial(_matmul_kernel, relu=relu),
        out_shape=jax.ShapeDtypeStruct((Mp, Np), jnp.float32),
        grid_spec=pltpu.PrefetchScalarGridSpec(
            num_scalar_prefetch=0,
            grid=(Mp // tm, Np // tn, Kp // tk),
            in_specs=[pl.BlockSpec((tm, tk), lambda i, j, k: (i, k)),
                      pl.BlockSpec((tk, tn), lambda i, j, k: (k, j)),
                      pl.BlockSpec((1, tn), lambda i, j, k: (0, j)),
                      pl.BlockSpec((1, tn), lambda i, j, k: (0, j))],
            out_specs=pl.BlockSpec((tm, tn), lambda i, j, k: (i, j)),
            scratch_shapes=[pltpu.VMEM((tm, tn), jnp.float32)]),
        compiler_params=pltpu.CompilerParams(
            dimension_semantics=("parallel", "parallel", "arbitrary"),
            vmem_limit_bytes=int(max(2 * vmem_bytes, 8 * 2**20))),
        cost_estimate=cost,
    )(a_bf, b_bf, s_p, t_p)
    return out[:M, :N]


# ----------------------------------------------------------------------------
# Conv2d (NHWC) lowered to the fused Pallas matmul
# ----------------------------------------------------------------------------
@functools.partial(jax.jit, static_argnames=("kh", "kw", "stride", "padding", "relu"))
def _conv2d_impl(x, wm, scale, shift, *, kh, kw, stride, padding, relu):
    """x: (N, H, W, Cin) NHWC; wm: (kh*kw*Cin, Cout) bf16; epilogue fused."""
    N, H, W, Cin = x.shape
    Cout = wm.shape[1]
    if kh == 1 and kw == 1 and padding == 0:
        # 1x1 conv: no im2col at all (strided slice handles stride > 1).
        xs = x[:, ::stride, ::stride, :] if stride > 1 else x
        _, oh, ow, _ = xs.shape
        a = xs.reshape(N * oh * ow, Cin)
    else:
        # TODO(synk): the k*k taps could be folded into the matmul K grid axis
        # (shifted index_map on the padded activation) to avoid this im2col
        # materialization entirely.
        xp = jnp.pad(x, ((0, 0), (padding, padding), (padding, padding), (0, 0)))
        oh = (H + 2 * padding - kh) // stride + 1
        ow = (W + 2 * padding - kw) // stride + 1
        rows = (jnp.arange(oh) * stride)[:, None] + jnp.arange(kh)[None, :]   # (oh, kh)
        cols = (jnp.arange(ow) * stride)[:, None] + jnp.arange(kw)[None, :]   # (ow, kw)
        patches = xp[:, rows[:, None, :, None], cols[None, :, None, :], :]    # (N,oh,ow,kh,kw,C)
        a = patches.reshape(N * oh * ow, kh * kw * Cin)                       # no transpose
    out = pallas_matmul_fused(a, wm, scale, shift, relu=relu)
    return out.reshape(N, oh, ow, Cout)


def conv2d(x, p, stride=1, padding=0, relu=False):
    return _conv2d_impl(x, p['wm'], p['scale'], p['shift'],
                        kh=p['kh'], kw=p['kw'], stride=stride,
                        padding=padding, relu=relu)


# ----------------------------------------------------------------------------
# Pallas kernel 2: InstanceNorm2d (affine=False, biased var), NHWC, optional ReLU
# ----------------------------------------------------------------------------
def _instnorm_kernel(x_ref, o_ref, *, L, eps, relu, masked):
    x = x_ref[0]                                            # (Lp, TILE_C)
    if masked:
        row = jax.lax.broadcasted_iota(jnp.int32, x.shape, 0)
        m = (row < L).astype(jnp.float32)
        xm = x * m
    else:
        m = None
        xm = x
    mean = jnp.sum(xm, axis=0, keepdims=True) * (1.0 / L)   # (1, TILE_C)
    d = x - mean
    if masked:
        d = d * m
    var = jnp.sum(d * d, axis=0, keepdims=True) * (1.0 / L)  # two-pass variance
    y = (x - mean) * jax.lax.rsqrt(var + eps)
    if relu:
        y = jnp.maximum(y, 0.0)
    o_ref[0] = y


@functools.partial(jax.jit, static_argnames=("eps", "relu"))
def instance_norm_nhwc(x, eps=1e-5, relu=False):
    """nn.InstanceNorm2d (affine=False) on NHWC input with optional fused ReLU."""
    B, H, W, C = x.shape
    L = H * W
    Lp = _round_up(L, 8)
    Cp = _round_up(C, 128)
    TC = 128                       # channel tiles are independent -> parallel grid
    xf = x.reshape(B, L, C).astype(jnp.float32)
    if (Lp, Cp) != (L, C):
        xf = jnp.zeros((B, Lp, Cp), jnp.float32).at[:, :L, :C].set(xf)
    # TODO(synk): for very large H*W a two-pass HW-tiled reduction would be
    # needed to keep the per-block footprint small on v7x.
    out = pl.pallas_call(
        functools.partial(_instnorm_kernel, L=float(L), eps=float(eps),
                          relu=relu, masked=(Lp != L)),
        out_shape=jax.ShapeDtypeStruct((B, Lp, Cp), jnp.float32),
        grid=(B, Cp // TC),
        in_specs=[pl.BlockSpec((1, Lp, TC), lambda b, c: (b, 0, c))],
        out_specs=pl.BlockSpec((1, Lp, TC), lambda b, c: (b, 0, c)),
        compiler_params=pltpu.CompilerParams(
            dimension_semantics=("parallel", "parallel")),
    )(xf)
    return out[:, :L, :C].reshape(B, H, W, C)


# ----------------------------------------------------------------------------
# Pallas kernel 3: multi-camera voxel reduction, tiled over the voxel axis
#    feat_mem = sum_S(feat_voxels) / clamp(sum_S(feat_valids), min=1)
# ----------------------------------------------------------------------------
def _cam_reduce_kernel(fv_ref, va_ref, o_ref):
    fv = fv_ref[0]                                # (S, TV, Cp)
    va = va_ref[0]                                # (S, TV, 1)
    num = jnp.sum(fv, axis=0)                     # (TV, Cp)
    den = jnp.maximum(jnp.sum(va, axis=0), 1.0)   # (TV, 1)
    o_ref[0] = num / den


@jax.jit
def camera_reduce(feat, valid):
    """feat: (B,S,V,C), valid: (B,S,V) -> (B,V,C)."""
    B, S, V, C = feat.shape
    Cp = _round_up(C, 128)
    TV = 512 if V >= 512 else _round_up(V, 8)
    Vp = _round_up(V, TV)
    fv = feat.astype(jnp.float32)
    va = valid.astype(jnp.float32).reshape(B, S, V, 1)
    if (Vp, Cp) != (V, C):
        fv = jnp.zeros((B, S, Vp, Cp), jnp.float32).at[:, :, :V, :C].set(fv)
    if Vp != V:
        va = jnp.zeros((B, S, Vp, 1), jnp.float32).at[:, :, :V, :].set(va)
    out = pl.pallas_call(
        _cam_reduce_kernel,
        out_shape=jax.ShapeDtypeStruct((B, Vp, Cp), jnp.float32),
        grid=(B, Vp // TV),
        in_specs=[pl.BlockSpec((1, S, TV, Cp), lambda b, v: (b, 0, v, 0)),
                  pl.BlockSpec((1, S, TV, 1), lambda b, v: (b, 0, v, 0))],
        out_specs=pl.BlockSpec((1, TV, Cp), lambda b, v: (b, v, 0)),
        compiler_params=pltpu.CompilerParams(
            dimension_semantics=("parallel", "parallel")),
    )(fv, va)
    return out[:, :V, :C]


# ----------------------------------------------------------------------------
# JAX glue ops (NHWC)
# ----------------------------------------------------------------------------
@jax.jit
def upsample_bilinear_2x(x):
    """nn.Upsample(scale_factor=2, mode='bilinear', align_corners=False), NHWC."""
    B, H, W, C = x.shape

    def src_idx(out_size, in_size):
        o = jnp.arange(out_size, dtype=jnp.float32)
        s = (o + 0.5) / 2.0 - 0.5
        s = jnp.clip(s, 0.0, None)
        i0 = jnp.minimum(jnp.floor(s).astype(jnp.int32), in_size - 1)
        i1 = jnp.minimum(i0 + 1, in_size - 1)
        w1 = jnp.clip(s - i0.astype(jnp.float32), 0.0, 1.0)
        return i0, i1, w1

    h0, h1, wh = src_idx(2 * H, H)
    w0, w1, ww = src_idx(2 * W, W)
    xh = x[:, h0, :, :] * (1 - wh)[None, :, None, None] + \
         x[:, h1, :, :] * wh[None, :, None, None]
    xw = xh[:, :, w0, :] * (1 - ww)[None, None, :, None] + \
         xh[:, :, w1, :] * ww[None, None, :, None]
    return xw


@jax.jit
def max_pool_3x3_s2_p1(x):
    return jax.lax.reduce_window(
        x, -jnp.inf, jax.lax.max,
        window_dimensions=(1, 3, 3, 1), window_strides=(1, 2, 2, 1),
        padding=((0, 0), (1, 1), (1, 1), (0, 0)))


# ----------------------------------------------------------------------------
# Parameter generation (deterministic, synthetic); weights pre-packed for NHWC
# matmul, BatchNorm folded into the conv epilogue at build time.
# ----------------------------------------------------------------------------
class PG:
    def __init__(self, seed=1):
        self.key = jax.random.PRNGKey(seed)

    def _next(self):
        self.key, k = jax.random.split(self.key)
        return k

    def conv(self, cout, cin, kh, kw):
        fan_in = cin * kh * kw
        return jax.random.normal(self._next(), (cout, cin, kh, kw),
                                 jnp.float32) * (1.0 / jnp.sqrt(fan_in))

    def bias(self, c):
        return 0.01 * jax.random.normal(self._next(), (c,), jnp.float32)

    def bn(self, c):
        g = 1.0 + 0.1 * jax.random.normal(self._next(), (c,), jnp.float32)
        b = 0.1 * jax.random.normal(self._next(), (c,), jnp.float32)
        rm = 0.1 * jax.random.normal(self._next(), (c,), jnp.float32)
        rv = 1.0 + 0.1 * jnp.abs(jax.random.normal(self._next(), (c,), jnp.float32))
        return (g, b, rm, rv)


def conv_p(pg, cout, cin, kh, kw, bias=False):
    """Conv weights pre-transposed to (kh*kw*Cin, Cout) bf16; optional bias -> shift."""
    w = pg.conv(cout, cin, kh, kw)                               # PyTorch (Cout,Cin,kh,kw)
    wm = jnp.transpose(w, (2, 3, 1, 0)).reshape(kh * kw * cin, cout)
    return {'wm': wm.astype(jnp.bfloat16), 'kh': kh, 'kw': kw,
            'scale': jnp.ones((cout,), jnp.float32),
            'shift': pg.bias(cout) if bias else jnp.zeros((cout,), jnp.float32)}


def conv_bn_p(pg, cout, cin, kh, kw, eps=1e-5):
    """Conv (bias=False) followed by eval-mode BatchNorm, folded to (scale, shift)."""
    p = conv_p(pg, cout, cin, kh, kw)
    g, b, rm, rv = pg.bn(cout)
    s = g / jnp.sqrt(rv + eps)
    p['scale'] = s
    p['shift'] = b - rm * s
    return p


# --- ResNet building blocks ---
def make_bottleneck(pg, inplanes, planes, stride, downsample):
    p = {'conv1': conv_bn_p(pg, planes, inplanes, 1, 1),
         'conv2': conv_bn_p(pg, planes, planes, 3, 3),
         'conv3': conv_bn_p(pg, planes * 4, planes, 1, 1),
         'stride': stride}
    if downsample:
        p['down'] = conv_bn_p(pg, planes * 4, inplanes, 1, 1)
    return p


def bottleneck_fwd(x, p):
    identity = x
    out = conv2d(x, p['conv1'], relu=True)                                    # 1x1 +BN+ReLU
    out = conv2d(out, p['conv2'], stride=p['stride'], padding=1, relu=True)   # 3x3 +BN+ReLU
    out = conv2d(out, p['conv3'])                                             # 1x1 +BN
    if 'down' in p:
        identity = conv2d(x, p['down'], stride=p['stride'])                   # 1x1 +BN
    return jnp.maximum(out + identity, 0.0)


def make_basic(pg, inplanes, planes, stride, downsample):
    p = {'conv1': conv_bn_p(pg, planes, inplanes, 3, 3),
         'conv2': conv_bn_p(pg, planes, planes, 3, 3),
         'stride': stride}
    if downsample:
        p['down'] = conv_bn_p(pg, planes, inplanes, 1, 1)
    return p


def basic_fwd(x, p):
    identity = x
    out = conv2d(x, p['conv1'], stride=p['stride'], padding=1, relu=True)
    out = conv2d(out, p['conv2'], padding=1)
    if 'down' in p:
        identity = conv2d(x, p['down'], stride=p['stride'])
    return jnp.maximum(out + identity, 0.0)


# --- Encoder: ResNetEncoder(latent_dim, resnet101) ---
def make_resnet101_encoder(pg, C):
    enc = {'stem': conv_bn_p(pg, 64, 3, 7, 7)}

    def make_layer(inplanes, planes, nblocks, stride):
        blocks = [make_bottleneck(pg, inplanes, planes, stride,
                                  downsample=(stride != 1 or inplanes != planes * 4))]
        inp = planes * 4
        for _ in range(nblocks - 1):
            blocks.append(make_bottleneck(pg, inp, planes, 1, False))
        return blocks, inp

    enc['layer1'], inp = make_layer(64, 64, 3, 1)
    enc['layer2'], inp = make_layer(inp, 128, 4, 2)
    enc['layer3'], inp = make_layer(inp, 256, 23, 2)
    # UpsamplingConcat(1536, 512)
    enc['uc_conv1'] = conv_p(pg, 512, 1536, 3, 3)
    enc['uc_conv2'] = conv_p(pg, 512, 512, 3, 3)
    # depth_layer: 512 -> C, 1x1, bias=True
    enc['depth'] = conv_p(pg, C, 512, 1, 1, bias=True)
    return enc


def resnet_encoder_fwd(x, enc):
    # backbone = conv1, bn1, relu, maxpool, layer1, layer2
    x = conv2d(x, enc['stem'], stride=2, padding=3, relu=True)
    x = max_pool_3x3_s2_p1(x)
    for blk in enc['layer1']:
        x = bottleneck_fwd(x, blk)
    for blk in enc['layer2']:
        x = bottleneck_fwd(x, blk)
    x1 = x                                         # (N, H/8, W/8, 512)
    x2 = x1
    for blk in enc['layer3']:
        x2 = bottleneck_fwd(x2, blk)               # (N, H/16, W/16, 1024)
    # UpsamplingConcat(1536, 512)
    up = upsample_bilinear_2x(x2)
    x = jnp.concatenate([x1, up], axis=-1)         # cat([x, x_to_upsample], dim=C)
    x = instance_norm_nhwc(conv2d(x, enc['uc_conv1'], padding=1), relu=True)
    x = instance_norm_nhwc(conv2d(x, enc['uc_conv2'], padding=1), relu=True)
    x = conv2d(x, enc['depth'])
    return x                                       # (N, H/8, W/8, latent_dim)


# --- Decoder: ResnetFPN2d(latent_dim) + heads ---
def make_fpn(pg, in_channels):
    fpn = {'first': conv_bn_p(pg, 64, in_channels, 7, 7)}
    fpn['layer1'] = [make_basic(pg, 64, 64, 1, False),
                     make_basic(pg, 64, 64, 1, False)]
    fpn['layer2'] = [make_basic(pg, 64, 128, 2, True),
                     make_basic(pg, 128, 128, 1, False)]
    fpn['layer3'] = [make_basic(pg, 128, 256, 2, True),
                     make_basic(pg, 256, 256, 1, False)]
    fpn['up3'] = conv_p(pg, 128, 256, 1, 1)              # UpsamplingAdd2d(256, 128)
    fpn['up2'] = conv_p(pg, 64, 128, 1, 1)               # UpsamplingAdd2d(128, 64)
    fpn['up1'] = conv_p(pg, in_channels, 64, 1, 1)       # UpsamplingAdd2d(64, in_channels)
    return fpn


def upsampling_add_fwd(x, x_skip, p):
    x = upsample_bilinear_2x(x)
    x = conv2d(x, p)
    x = instance_norm_nhwc(x)
    return x + x_skip


def fpn_fwd(x, fpn):
    skip1 = x
    x = conv2d(x, fpn['first'], stride=2, padding=3, relu=True)
    for blk in fpn['layer1']:
        x = basic_fwd(x, blk)
    skip2 = x
    for blk in fpn['layer2']:
        x = basic_fwd(x, blk)
    skip3 = x
    x4 = x
    for blk in fpn['layer3']:
        x4 = basic_fwd(x4, blk)
    x = upsampling_add_fwd(x4, skip3, fpn['up3'])
    x = upsampling_add_fwd(x, skip2, fpn['up2'])
    x = upsampling_add_fwd(x, skip1, fpn['up1'])
    return x, x4


def make_head(pg, c, cout):
    return {'c1': conv_p(pg, c, c, 3, 3),
            'c2': conv_p(pg, cout, c, 1, 1, bias=True)}


def head_fwd(x, h):
    y = instance_norm_nhwc(conv2d(x, h['c1'], padding=1), relu=True)
    return conv2d(y, h['c2'])


# ----------------------------------------------------------------------------
# lift_cam_to_voxel (NHWC features, row gather with C on lanes)
# ----------------------------------------------------------------------------
@functools.partial(jax.jit, static_argnames=("grid_shape",))
def lift_cam_to_voxel(features, K, T, grid_shape):
    """features: (N,Hf,Wf,C), K: (N,4,4) normalized intrinsics, T: (N,4,4).
    Returns samples (N, V, C) and validity (N, V), V = X*Y*Z (z fastest)."""
    # TODO(synk): exact torchdrive lift_cam_to_voxel source not provided; standard
    # Simple-BEV projection + bilinear sampling with validity mask is used here.
    N, Hf, Wf, C = features.shape
    X, Y, Z = grid_shape
    xs = jnp.arange(X, dtype=jnp.float32) - (X - 1) / 2.0
    ys = jnp.arange(Y, dtype=jnp.float32) + 1.0            # depth axis (in front of cam)
    zs = jnp.arange(Z, dtype=jnp.float32) - (Z - 1) / 2.0
    gx, gy, gz = jnp.meshgrid(xs, ys, zs, indexing='ij')   # (X, Y, Z)
    pts = jnp.stack([gx, gz, gy, jnp.ones_like(gx)], axis=-1).reshape(-1, 4)  # (V,4)

    cam_pts = jnp.einsum('nij,vj->nvi', T, pts)            # (N, V, 4)
    pix = jnp.einsum('nij,nvj->nvi', K, cam_pts)           # (N, V, 4)
    zc = pix[..., 2]
    eps = 1e-6
    u = pix[..., 0] / jnp.maximum(zc, eps)
    v = pix[..., 1] / jnp.maximum(zc, eps)
    valid = (zc > eps) & (u >= 0.0) & (u <= 1.0) & (v >= 0.0) & (v <= 1.0)

    fx = u * Wf - 0.5
    fy = v * Hf - 0.5
    x0 = jnp.floor(fx).astype(jnp.int32)
    y0 = jnp.floor(fy).astype(jnp.int32)
    x1 = x0 + 1
    y1 = y0 + 1
    wx1 = fx - x0.astype(jnp.float32)
    wy1 = fy - y0.astype(jnp.float32)

    flat = features.reshape(N, Hf * Wf, C)                 # channels-last: row gather

    def gather(yy, xx):
        inb = (yy >= 0) & (yy < Hf) & (xx >= 0) & (xx < Wf)
        idx = jnp.clip(yy, 0, Hf - 1) * Wf + jnp.clip(xx, 0, Wf - 1)   # (N, V)
        g = jnp.take_along_axis(flat, idx[:, :, None], axis=1)          # (N, V, C)
        return g * inb[:, :, None].astype(jnp.float32)

    f00 = gather(y0, x0)
    f01 = gather(y0, x1)
    f10 = gather(y1, x0)
    f11 = gather(y1, x1)
    w00 = ((1 - wy1) * (1 - wx1))[:, :, None]
    w01 = ((1 - wy1) * wx1)[:, :, None]
    w10 = (wy1 * (1 - wx1))[:, :, None]
    w11 = (wy1 * wx1)[:, :, None]
    samp = f00 * w00 + f01 * w01 + f10 * w10 + f11 * w11
    samp = samp * valid[:, :, None].astype(jnp.float32)
    return samp, valid.astype(jnp.float32)


# ----------------------------------------------------------------------------
# Segnet
# ----------------------------------------------------------------------------
def build_segnet_params(seed, latent_dim, grid_shape):
    pg = PG(seed)
    X, Y, Z = grid_shape
    return {'encoder': make_resnet101_encoder(pg, latent_dim),
            'bev': conv_p(pg, latent_dim, latent_dim * Z, 3, 3),  # do_rgbcompress branch
            'fpn': make_fpn(pg, latent_dim),
            'feat_head': make_head(pg, latent_dim, latent_dim),
            'seg_head': make_head(pg, latent_dim, 1),
            'center_head': make_head(pg, latent_dim, 1),
            'offset_head': make_head(pg, latent_dim, 2)}


def segnet_forward(params, rgb_camXs, pix_T_cams, cam0_T_camXs, grid_shape):
    B, S, C, H, W = rgb_camXs.shape
    assert C == 3
    X, Y, Z = grid_shape

    # normalize (torchvision transforms.Normalize over channel dim), then NHWC
    mean = jnp.array([0.485, 0.456, 0.406], jnp.float32)
    std = jnp.array([0.229, 0.224, 0.225], jnp.float32)
    rgb = (rgb_camXs - mean[None, None, :, None, None]) / std[None, None, :, None, None]
    rgb_ = jnp.transpose(rgb.reshape(B * S, C, H, W), (0, 2, 3, 1))

    # encoder
    feat_camXs = resnet_encoder_fwd(rgb_, params['encoder'])   # (B*S, H/8, W/8, latent)

    # lift to voxels (pinverse -> exact 4x4 inverse; much cheaper than SVD)
    K_ = pix_T_cams.reshape(B * S, 4, 4)
    T_ = jnp.linalg.inv(cam0_T_camXs).reshape(B * S, 4, 4)
    samp, valid = lift_cam_to_voxel(feat_camXs, K_, T_, (X, Y, Z))  # (BS,V,Cc), (BS,V)
    Cc = samp.shape[-1]
    V = X * Y * Z

    # camera reduction (Pallas kernel, tiled over the voxel axis)
    fv = samp.reshape(B, S, V, Cc)
    va = valid.reshape(B, S, V)
    feat_mem = camera_reduce(fv, va)                           # (B, V, Cc)

    # do_rgbcompress: NCHW (B,C,X,Y,Z)->(B,C*Z,X,Y) == NHWC (B,X,Y,C*Z) (c-major)
    feat_bev_ = feat_mem.reshape(B, X, Y, Z, Cc)
    feat_bev_ = jnp.transpose(feat_bev_, (0, 1, 2, 4, 3)).reshape(B, X, Y, Cc * Z)
    x = conv2d(feat_bev_, params['bev'], padding=1)
    x = instance_norm_nhwc(x)
    feat_bev = jax.nn.gelu(x, approximate=False)

    # decoder (ResnetFPN2d + heads)
    raw, _x4 = fpn_fwd(feat_bev, params['fpn'])
    feat = head_fwd(raw, params['feat_head'])
    seg = head_fwd(raw, params['seg_head'])
    center = jax.nn.sigmoid(head_fwd(raw, params['center_head']))
    offset = head_fwd(raw, params['offset_head'])

    def to_nchw(t):
        return jnp.transpose(t, (0, 3, 1, 2))

    return (to_nchw(raw), to_nchw(feat), to_nchw(seg),
            to_nchw(center), to_nchw(offset))


# ----------------------------------------------------------------------------
if __name__ == "__main__":
    B, S, C, H, W = 1, 2, 3, 64, 64
    grid_shape = (16, 16, 4)          # (X, Y, Z)
    latent_dim = 32

    key = jax.random.PRNGKey(0)
    k1, k2 = jax.random.split(key)

    rgb_camXs = jax.random.uniform(k1, (B, S, C, H, W), jnp.float32)

    # normalized intrinsics (height/width == 1)
    K = jnp.array([[0.5, 0.0, 0.5, 0.0],
                   [0.0, 0.5, 0.5, 0.0],
                   [0.0, 0.0, 1.0, 0.0],
                   [0.0, 0.0, 0.0, 1.0]], jnp.float32)
    pix_T_cams = jnp.broadcast_to(K, (B, S, 4, 4))

    # extrinsics: identity with small per-camera translation
    eye = jnp.eye(4, dtype=jnp.float32)
    offs = 0.2 * jnp.arange(S, dtype=jnp.float32)
    cam0_T_camXs = jnp.broadcast_to(eye, (B, S, 4, 4))
    cam0_T_camXs = cam0_T_camXs.at[:, :, 0, 3].set(offs[None, :])

    params = build_segnet_params(seed=1, latent_dim=latent_dim, grid_shape=grid_shape)

    raw_e, feat_e, seg_e, center_e, offset_e = segnet_forward(
        params, rgb_camXs, pix_T_cams, cam0_T_camXs, grid_shape)
    jax.block_until_ready((raw_e, feat_e, seg_e, center_e, offset_e))

    X, Y, _Z = grid_shape
    assert raw_e.shape == (B, latent_dim, X, Y)
    assert feat_e.shape == (B, latent_dim, X, Y)
    assert seg_e.shape == (B, 1, X, Y)
    assert center_e.shape == (B, 1, X, Y)
    assert offset_e.shape == (B, 2, X, Y)
    assert all(bool(jnp.all(jnp.isfinite(t))) for t in
               (raw_e, feat_e, seg_e, center_e, offset_e))

    print("KERNEL_OK")
</pallas_src>

<mosaic_0001>
module attributes {stable_mosaic.version = 11 : i64} {
  func.func @_matmul_kernel(%arg0: i32, %arg1: i32, %arg2: i32, %arg3: memref<256x256xbf16, #tpu.memory_space<vmem>>, %arg4: memref<256x128xbf16, #tpu.memory_space<vmem>>, %arg5: memref<1x128xf32, #tpu.memory_space<vmem>>, %arg6: memref<1x128xf32, #tpu.memory_space<vmem>>, %arg7: memref<256x128xf32, #tpu.memory_space<vmem>>, %arg8: memref<256x128xf32, #tpu.memory_space<vmem>>) attributes {dimension_semantics = [#tpu.dimension_semantics<parallel>, #tpu.dimension_semantics<parallel>, #tpu.dimension_semantics<arbitrary>], iteration_bounds = array<i64: 8, 1, 1>, scalar_prefetch = 0 : i64, scratch_operands = 1 : i64, tpu.core_type = #tpu.core_type<tc>, window_params = [{transform_indices = @transform_0, window_bounds = array<i64: 256, 256>}, {transform_indices = @transform_1, window_bounds = array<i64: 256, 128>}, {transform_indices = @transform_2, window_bounds = array<i64: 1, 128>}, {transform_indices = @transform_3, window_bounds = array<i64: 1, 128>}, {transform_indices = @transform_4, window_bounds = array<i64: 256, 128>}]} {
    %c0_i32 = arith.constant 0 : i32
    %0 = arith.cmpi eq, %arg2, %c0_i32 : i32
    %1 = arith.extui %0 : i1 to i32
    %c0_i32_0 = arith.constant 0 : i32
    %2 = arith.cmpi ne, %1, %c0_i32_0 : i32
    scf.if %2 {
      %cst_10 = arith.constant 0.000000e+00 : f32
      %12 = vector.broadcast %cst_10 : f32 to vector<256x128xf32>
      %c0_11 = arith.constant 0 : index
      %c0_12 = arith.constant 0 : index
      %13 = vector.load %arg8[%c0_11, %c0_12] : memref<256x128xf32, #tpu.memory_space<vmem>>, vector<256x128xf32>
      tpu.vector_store %arg8[%c0_11, %c0_12], %12 {strides = array<i32>} : memref<256x128xf32, #tpu.memory_space<vmem>>, vector<256x128xf32>,
    } else {
    }
    %c0 = arith.constant 0 : index
    %c0_1 = arith.constant 0 : index
    %3 = vector.load %arg8[%c0, %c0_1] : memref<256x128xf32, #tpu.memory_space<vmem>>, vector<256x128xf32>
    %c0_2 = arith.constant 0 : index
    %c0_3 = arith.constant 0 : index
    %4 = vector.load %arg3[%c0_2, %c0_3] : memref<256x256xbf16, #tpu.memory_space<vmem>>, vector<256x256xbf16>
    %c0_4 = arith.constant 0 : index
    %c0_5 = arith.constant 0 : index
    %5 = vector.load %arg4[%c0_4, %c0_5] : memref<256x128xbf16, #tpu.memory_space<vmem>>, vector<256x128xbf16>
    %cst = arith.constant dense<0.000000e+00> : vector<256x128xf32>
    %6 = tpu.matmul %4, %5, %cst {dimension_numbers = #tpu.dot_dimension_numbers<[1], [0], [0], [1], [0, 0, 1, 1], [], []>} : vector<256x256xbf16>, vector<256x128xbf16>, vector<256x128xf32> -> vector<256x128xf32>
    %7 = arith.addf %3, %6 : vector<256x128xf32>
    %c0_6 = arith.constant 0 : index
    %c0_7 = arith.constant 0 : index
    %8 = vector.load %arg8[%c0_6, %c0_7] : memref<256x128xf32, #tpu.memory_space<vmem>>, vector<256x128xf32>
    tpu.vector_store %arg8[%c0_6, %c0_7], %7 {strides = array<i32>} : memref<256x128xf32, #tpu.memory_space<vmem>>, vector<256x128xf32>,
    %c0_i32_8 = arith.constant 0 : i32
    %9 = arith.cmpi eq, %arg2, %c0_i32_8 : i32
    %10 = arith.extui %9 : i1 to i32
    %c0_i32_9 = arith.constant 0 : i32
    %11 = arith.cmpi ne, %10, %c0_i32_9 : i32
    scf.if %11 {
      %c0_10 = arith.constant 0 : index
      %c0_11 = arith.constant 0 : index
      %12 = vector.load %arg8[%c0_10, %c0_11] : memref<256x128xf32, #tpu.memory_space<vmem>>, vector<256x128xf32>
      %c0_12 = arith.constant 0 : index
      %c0_13 = arith.constant 0 : index
      %13 = vector.load %arg5[%c0_12, %c0_13] : memref<1x128xf32, #tpu.memory_space<vmem>>, vector<1x128xf32>
      %14 = vector.broadcast %13 : vector<1x128xf32> to vector<256x128xf32>
      %15 = arith.mulf %12, %14 : vector<256x128xf32>
      %c0_14 = arith.constant 0 : index
      %c0_15 = arith.constant 0 : index
      %16 = vector.load %arg6[%c0_14, %c0_15] : memref<1x128xf32, #tpu.memory_space<vmem>>, vector<1x128xf32>
      %17 = vector.broadcast %16 : vector<1x128xf32> to vector<256x128xf32>
      %18 = arith.addf %15, %17 : vector<256x128xf32>
      %cst_16 = arith.constant 0.000000e+00 : f32
      %19 = vector.broadcast %cst_16 : f32 to vector<256x128xf32>
      %20 = arith.maximumf %18, %19 : vector<256x128xf32>
      %c0_17 = arith.constant 0 : index
      %c0_18 = arith.constant 0 : index
      %21 = vector.load %arg7[%c0_17, %c0_18] : memref<256x128xf32, #tpu.memory_space<vmem>>, vector<256x128xf32>
      tpu.vector_store %arg7[%c0_17, %c0_18], %20 {strides = array<i32>} : memref<256x128xf32, #tpu.memory_space<vmem>>, vector<256x128xf32>,
    } else {
    }
    return
  }
  func.func @transform_0(%arg0: i32, %arg1: i32, %arg2: i32) -> (i32, i32) {
    %c0_i32 = arith.constant 0 : i32
    return %arg0, %arg2 : i32, i32
  }
  func.func @transform_1(%arg0: i32, %arg1: i32, %arg2: i32) -> (i32, i32) {
    %c0_i32 = arith.constant 0 : i32
    return %arg2, %arg1 : i32, i32
  }
  func.func @transform_2(%arg0: i32, %arg1: i32, %arg2: i32) -> (i32, i32) {
    %c0_i32 = arith.constant 0 : i32
    %c0_i32_0 = arith.constant 0 : i32
    return %c0_i32, %arg1 : i32, i32
  }
  func.func @transform_3(%arg0: i32, %arg1: i32, %arg2: i32) -> (i32, i32) {
    %c0_i32 = arith.constant 0 : i32
    %c0_i32_0 = arith.constant 0 : i32
    return %c0_i32, %arg1 : i32, i32
  }
  func.func @transform_4(%arg0: i32, %arg1: i32, %arg2: i32) -> (i32, i32) {
    %c0_i32 = arith.constant 0 : i32
    return %arg0, %arg1 : i32, i32
  }
}

</mosaic_0001>

<bundles_post_ra>
// kernel: _conv2d_impl.1
= control target key start
LH: loop header
LB: loop body
LE: loop exit
PB: predicated region body
PF: predicated region fallthrough
CT: control target
= control target key end

     0   :  { %9 = vsyncpa [#allocation4], 0  ;;  %s1964_s0 = inlined_call_operand.vmem [shape: bf16[2048,256], index: 0, kind: input, shape index: {}]   ;;  %s1965_s1 = inlined_call_operand.vmem [shape: bf16[256,128], index: 1, kind: input, shape index: {}]   ;;  %s1966_s2 = inlined_call_operand.vmem [shape: f32[1,128], index: 2, kind: input, shape index: {}]   ;;  %s1967_s3 = inlined_call_operand.vmem [shape: f32[1,128], index: 3, kind: input, shape index: {}]   ;;  %s1968_s4 = inlined_call_operand.hbm [shape: f32[2048,128], index: 4, kind: output, shape index: {}]  }
   0x1   :  { %11 = vsyncpa [#allocation4 + $0x1], 0  ;;  %s1655_s15 = smov 0   ;;  %s1657_s16 = smov 0  }
   0x2   :  { %s1659_s17 = smov 0   ;;  %s1661_s18 = smov 0  }
   0x3   :  { %s1663_s19 = smov 0   ;;  %s1665_s20 = smov 0  }
   0x4 LB: > { %s1229_s21 = sadd.s32 4294967295, %s1625_s20   ;;  %s1230_s22 = sadd.s32 4294967294, %s1625_s20   ;;  %s1625_s20 = sphi %s1665_s20, %s17_s20   ;;  %s1621_s19 = sphi %s1663_s19, %s1975_s19   ;;  %s1617_s18 = sphi %s1661_s18, %s1974_s18   ;;  %s1613_s17 = sphi %s1659_s17, %s1973_s17   ;;  %s1609_s16 = sphi %s1657_s16, %s1972_s16   ;;  %s1605_s15 = sphi %s1655_s15, %s1971_s15  }
   0x5   : > { %s36_s23 = sadd.s32 1, %s1621_s19  ;;  %s153_s24 = sadd.s32 1, %s1613_s17 }
   0x6   : > { %p38_p0 = scmp.ge.s32.totalorder %s36_s23, 8  ;;  %p163_p1 = scmp.ne.s32.totalorder %s1613_s17, %s1609_s16 }
   0x7   : > { %p164_p2 = scmp.eq.s32.totalorder %s1229_s21, 7  ;;  %p169_p3 = scmp.ne.s32.totalorder %s1609_s16, %s1605_s15 }
   0x8   : > { %s1977_s23 = smov (%p38_p0, %s36_s23), 0  ;;  %p170_p5 = scmp.eq.s32.totalorder %s1230_s22, 7 }
   0x9   : > { %p1695_p4 = por %p164_p2, %p163_p1  ;;  %s148_s26 = ssub.s32 %s1621_s19, %s1977_s23 }
   0xa   : > { %p1236_p6 = scmp.ge.s32.totalorder %s1625_s20, 1  ;;  %p151_p7 = scmp.eq.s32.totalorder %s148_s26, 0 }
   0xb   : > { %p1702_p8 = por %p170_p5, %p169_p3  ;;  %p227_p9 = scmp.lt.s32.totalorder %s1625_s20, 9 }
   0xc   : > { %s1708_s28 = scalar_select %p151_p7, %s1613_s17, %s153_s24  }
   0xd   : > { %p228_p10 = pnand %p1236_p6, %p227_p9 }
   0xe   : > { %v1483_v0 = vld [vmem:[%s1965_s1 + $0x40] sm:$0xff] (!%p228_p10)   ;;  %s1238_s5 = sshll.u32 (!%p228_p10), %s1617_s18, 5  ;;  %v1485_v2 = vld [vmem:[%s1965_s1 + $0x48] sm:$0xff] (!%p228_p10)   ;;  %v1487_v4 = vld [vmem:[%s1965_s1 + $0x50] sm:$0xff] (!%p228_p10)   ;;  %s269_s9 = sand.u32 (!%p228_p10), 1, %s1609_s16  }
   0xf   : > { %231 = sbr.rel (%p228_p10) target bundleno = 342 (0x156), region = 36  ;;  %v1484_v1 = vld [vmem:[%s1965_s1] sm:$0xff] (!%p228_p10)   ;;  %1298 = vmatprep.subr.bf16.mxu0 (!%p228_p10), %v1483_v0  ;;  %1410 = vmatprep.subr.bf16.mxu1 (!%p228_p10), %v1483_v0  ;;  %v1486_v3 = vld [vmem:[%s1965_s1 + $0x8] sm:$0xff] (!%p228_p10)   ;;  %p274_p11 = scmp.lt.s32.totalorder (!%p228_p10), %s1238_s5, 255  ;;  %v1488_v5 = vld [vmem:[%s1965_s1 + $0x10] sm:$0xff] (!%p228_p10)  }
  0x10   : > { %1299 = vmatpush3.bf16.msra.mxu0 (!%p228_p10), %v1484_v1  ;;  %1418 = vmatpush3.bf16.msra.mxu1 (!%p228_p10), %v1484_v1  ;;  %v1489_v6 = vld [vmem:[%s1965_s1 + $0x58] sm:$0xff] (!%p228_p10)   ;;  %v1491_v8 = vld [vmem:[%s1965_s1 + $0x60] sm:$0xff] (!%p228_p10)   ;;  %v1493_v10 = vld [vmem:[%s1965_s1 + $0x68] sm:$0xff] (!%p228_p10)   ;;  %s1297_s21 = sshll.u32 (!%p228_p10), %s1617_s18, 12  ;;  %s1918_s18 = scalar_lea.sflag (!%p228_p10), [#allocation4], %s269_s9 }
  0x11   : > { %1300 = vmatprep.subr.bf16.mxu0 (!%p228_p10), %v1485_v2  ;;  %1411 = vmatprep.subr.bf16.mxu1 (!%p228_p10), %v1485_v2  ;;  %v1490_v7 = vld [vmem:[%s1965_s1 + $0x18] sm:$0xff] (!%p228_p10)   ;;  %v1492_v9 = vld [vmem:[%s1965_s1 + $0x20] sm:$0xff] (!%p228_p10)   ;;  %v1494_v13 = vld [vmem:[%s1965_s1 + $0x28] sm:$0xff] (!%p228_p10)   ;;  %s1908_s29 = scalar_lea.hbm (!%p228_p10), %s1968_s4, %s1297_s21  ;;  %s1627_s6 = smov (!%p228_p10), [#allocation3]  }
  0x12   : > { %v1495_v14 = vld [vmem:[%s1965_s1 + $0x70] sm:$0xff] (!%p228_p10)   ;;  %v1497_v16 = vld [vmem:[%s1965_s1 + $0x78] sm:$0xff] (!%p228_p10)   ;;  %v1800_v51 = vld [vmem:[%s1966_s2] ss:$0 sm:$0xff] (!%p228_p10)  ;;  %s1551_s7 = sshll.u32 (!%p228_p10), %s1627_s6, 4  ;;  %s1552_s7 = int_to_ptr.vmem [resolvable:$false] %s1551_s7 }
  0x13   : > { %v1496_v15 = vld [vmem:[%s1965_s1 + $0x30] sm:$0xff] (!%p228_p10)   ;;  %v1498_v17 = vld [vmem:[%s1965_s1 + $0x38] sm:$0xff] (!%p228_p10)   ;;  %v1805_v57 = vld [vmem:[%s1967_s3] ss:$0 sm:$0xff] (!%p228_p10)  ;;  %s1553_s8 = scalar_lea.vmem (!%p228_p10), %s1552_s7, 8192 }
  0x14   : > { %1301 = vmatpush3.bf16.msra.mxu0 (!%p228_p10), %v1486_v3  ;;  %1419 = vmatpush3.bf16.msra.mxu1 (!%p228_p10), %v1486_v3 }
  0x15   : > { %1302 = vmatprep.subr.bf16.mxu0 (!%p228_p10), %v1487_v4  ;;  %1412 = vmatprep.subr.bf16.mxu1 (!%p228_p10), %v1487_v4 }
  0x16   : > { %s1979_s5 = smov (!%p274_p11, %s1238_s5), 255 }
  0x17   : > { %s1296_s30 = sshll.u32 %s1979_s5, 3 }
  0x18   : > { %1303 = vmatpush3.bf16.msra.mxu0 %v1488_v5  ;;  %1420 = vmatpush3.bf16.msra.mxu1 %v1488_v5  ;;  %s1741_s10 = scalar_lea.vmem %s1964_s0, %s1296_s30 }
  0x19   : > { %1304 = vmatprep.subr.bf16.mxu0 %v1489_v6  ;;  %1413 = vmatprep.subr.bf16.mxu1 %v1489_v6  ;;  %v1501_v11 = vld [vmem:[%s1741_s10 + $0x4] ss:$8 sps:$4 sm:$0xff]   ;;  %v1499_v18 = vld [vmem:[%s1741_s10] ss:$8 sps:$4 sm:$0xff]   ;;  %v1505_v20 = vld [vmem:[%s1741_s10 + $0x14] ss:$8 sps:$4 sm:$0xff]  }
  0x1a   : > { %v1504_v12 = vld [vmem:[%s1741_s10 + $0x84] ss:$8 sps:$4 sm:$0xff]   ;;  %721 = vmatprep.mubr.bf16.mxu0 %v1501_v11  ;;  %v1502_v19 = vld [vmem:[%s1741_s10 + $0x80] ss:$8 sps:$4 sm:$0xff]   ;;  %v1507_v21 = vld [vmem:[%s1741_s10 + $0x94] ss:$8 sps:$4 sm:$0xff]  }
  0x1b   : > { %785 = vmatprep.mubr.bf16.mxu1 %v1504_v12  ;;  %v1509_v22 = vld [vmem:[%s1741_s10 + $0x10] ss:$8 sps:$4 sm:$0xff]   ;;  %v1511_v24 = vld [vmem:[%s1741_s10 + $0x24] ss:$8 sps:$4 sm:$0xff]   ;;  %v1515_v26 = vld [vmem:[%s1741_s10 + $0x20] ss:$8 sps:$4 sm:$0xff]  }
  0x1c   : > { %1305 = vmatpush3.bf16.msra.mxu0 %v1490_v7  ;;  %1421 = vmatpush3.bf16.msra.mxu1 %v1490_v7  ;;  %v1510_v23 = vld [vmem:[%s1741_s10 + $0x90] ss:$8 sps:$4 sm:$0xff]   ;;  %v1513_v25 = vld [vmem:[%s1741_s10 + $0xa4] ss:$8 sps:$4 sm:$0xff]   ;;  %v1516_v27 = vld [vmem:[%s1741_s10 + $0xa0] ss:$8 sps:$4 sm:$0xff]  }
  0x1d   : > { %1306 = vmatprep.subr.bf16.mxu0 %v1491_v8  ;;  %1414 = vmatprep.subr.bf16.mxu1 %v1491_v8  ;;  %v1517_v28 = vld [vmem:[%s1741_s10 + $0x34] ss:$8 sps:$4 sm:$0xff]   ;;  %v1521_v30 = vld [vmem:[%s1741_s10 + $0x30] ss:$8 sps:$4 sm:$0xff]   ;;  %v1523_v32 = vld [vmem:[%s1741_s10 + $0x44] ss:$8 sps:$4 sm:$0xff]  }
  0x1e   : > { %v1519_v29 = vld [vmem:[%s1741_s10 + $0xb4] ss:$8 sps:$4 sm:$0xff]   ;;  %v1522_v31 = vld [vmem:[%s1741_s10 + $0xb0] ss:$8 sps:$4 sm:$0xff]   ;;  %v1525_v33 = vld [vmem:[%s1741_s10 + $0xc4] ss:$8 sps:$4 sm:$0xff]  }
  0x1f   : > { %v1527_v34 = vld [vmem:[%s1741_s10 + $0x40] ss:$8 sps:$4 sm:$0xff]   ;;  %v1529_v36 = vld [vmem:[%s1741_s10 + $0x54] ss:$8 sps:$4 sm:$0xff]   ;;  %v1533_v38 = vld [vmem:[%s1741_s10 + $0x50] ss:$8 sps:$4 sm:$0xff]  }
  0x20   : > { %1307 = vmatpush3.bf16.msra.mxu0 %v1492_v9  ;;  %1422 = vmatpush3.bf16.msra.mxu1 %v1492_v9  ;;  %v1528_v35 = vld [vmem:[%s1741_s10 + $0xc0] ss:$8 sps:$4 sm:$0xff]   ;;  %v1531_v37 = vld [vmem:[%s1741_s10 + $0xd4] ss:$8 sps:$4 sm:$0xff]   ;;  %v1534_v39 = vld [vmem:[%s1741_s10 + $0xd0] ss:$8 sps:$4 sm:$0xff]  }
  0x21   : > { %1308 = vmatprep.subr.bf16.mxu0 %v1493_v10  ;;  %1415 = vmatprep.subr.bf16.mxu1 %v1493_v10  ;;  %v1535_v40 = vld [vmem:[%s1741_s10 + $0x64] ss:$8 sps:$4 sm:$0xff]   ;;  %v1539_v42 = vld [vmem:[%s1741_s10 + $0x60] ss:$8 sps:$4 sm:$0xff]   ;;  %v1541_v44 = vld [vmem:[%s1741_s10 + $0x74] ss:$8 sps:$4 sm:$0xff]  }
  0x22   : > { %v1537_v41 = vld [vmem:[%s1741_s10 + $0xe4] ss:$8 sps:$4 sm:$0xff]   ;;  %v1540_v43 = vld [vmem:[%s1741_s10 + $0xe0] ss:$8 sps:$4 sm:$0xff]   ;;  %v1543_v45 = vld [vmem:[%s1741_s10 + $0xf4] ss:$8 sps:$4 sm:$0xff]  }
  0x23   : > { %v1545_v46 = vld [vmem:[%s1741_s10 + $0x70] ss:$8 sps:$4 sm:$0xff]  }
  0x24   : > { %1309 = vmatpush3.bf16.msra.mxu0 %v1494_v13  ;;  %1423 = vmatpush3.bf16.msra.mxu1 %v1494_v13  ;;  %v1546_v47 = vld [vmem:[%s1741_s10 + $0xf0] ss:$8 sps:$4 sm:$0xff]   ;;  %s1237_s10 = sshll.u32 %s269_s9, 8 }
  0x25   : > { %1310 = vmatprep.subr.bf16.mxu0 %v1495_v14  ;;  %1416 = vmatprep.subr.bf16.mxu1 %v1495_v14  ;;  %s1817_s14 = scalar_lea.vmem [#allocation3], %s1237_s10 }
  0x26   : > { %s1106_s22 = sshll.u32 %s1817_s14, 4  ;;  %s1910_s22 = int_to_ptr.vmem [resolvable:$true] %s1106_s22 }
  0x27   : > { %s1547_s30 = scalar_lea.vmem %s1910_s22, 4096  ;;  %p1554_p1 = scmp.lt.s32.totalorder %s1910_s22, %s1552_s7 }
  0x28   : > { %1311 = vmatpush3.bf16.msra.mxu0 %v1496_v15  ;;  %1424 = vmatpush3.bf16.msra.mxu1 %v1496_v15  ;;  %p1548_p12 = scmp.ne.s32.totalorder %s1910_s22, %s1547_s30  ;;  %p1555_p2 = scmp.lt.s32.totalorder %s1553_s8, %s1547_s30 }
  0x29   : > { %1312 = vmatprep.subr.bf16.mxu0 %v1497_v16  ;;  %1417 = vmatprep.subr.bf16.mxu1 %v1497_v16 }
  0x2a   : > { %p1549_p13 = pnand %p1548_p12, %p1695_p4  ;;  %p1556_p3 = por %p1555_p2, %p1554_p1 }
  0x2c   : > { %1313 = vmatpush3.bf16.msra.mxu0 %v1498_v17  ;;  %1425 = vmatpush3.bf16.msra.mxu1 %v1498_v17  ;;  %p1550_p0 = pneg %p1549_p13 }
  0x2e   : > { %p1557_p5 = pnand %p1556_p3, %p1550_p0 }
  0x2f   : > { %722 = vmatmul.mubr.bf16.vlgmr.msra.gmra.mrb[0].mxu0 %v1499_v18  ;;  %786 = vmatmul.mubr.bf16.vlgmr.msra.gmra.mrb[0].mxu1 %v1502_v19 }
  0x30   : > { %729 = vmatprep.mubr.bf16.mxu0 %v1505_v20  ;;  %793 = vmatprep.mubr.bf16.mxu1 %v1507_v21 }
  0x37   : > { %730 = vmatmul.mubr.bf16.gmra.mrb[4].mxu0 %v1509_v22  ;;  %794 = vmatmul.mubr.bf16.gmra.mrb[4].mxu1 %v1510_v23 }
  0x38   : > { %737 = vmatprep.mubr.bf16.mxu0 %v1511_v24  ;;  %801 = vmatprep.mubr.bf16.mxu1 %v1513_v25 }
  0x3f   : > { %738 = vmatmul.mubr.bf16.gmra.mrb[8].mxu0 %v1515_v26  ;;  %802 = vmatmul.mubr.bf16.gmra.mrb[8].mxu1 %v1516_v27 }
  0x40   : > { %745 = vmatprep.mubr.bf16.mxu0 %v1517_v28  ;;  %809 = vmatprep.mubr.bf16.mxu1 %v1519_v29 }
  0x47   : > { %746 = vmatmul.mubr.bf16.gmra.mrb[12].mxu0 %v1521_v30  ;;  %810 = vmatmul.mubr.bf16.gmra.mrb[12].mxu1 %v1522_v31 }
  0x48   : > { %753 = vmatprep.mubr.bf16.mxu0 %v1523_v32  ;;  %817 = vmatprep.mubr.bf16.mxu1 %v1525_v33 }
  0x4f   : > { %754 = vmatmul.mubr.bf16.gmra.mrb[16].mxu0 %v1527_v34  ;;  %818 = vmatmul.mubr.bf16.gmra.mrb[16].mxu1 %v1528_v35 }
  0x50   : > { %761 = vmatprep.mubr.bf16.mxu0 %v1529_v36  ;;  %825 = vmatprep.mubr.bf16.mxu1 %v1531_v37 }
  0x57   : > { %762 = vmatmul.mubr.bf16.gmra.mrb[20].mxu0 %v1533_v38  ;;  %826 = vmatmul.mubr.bf16.gmra.mrb[20].mxu1 %v1534_v39 }
  0x58   : > { %769 = vmatprep.mubr.bf16.mxu0 %v1535_v40  ;;  %833 = vmatprep.mubr.bf16.mxu1 %v1537_v41 }
  0x5f   : > { %770 = vmatmul.mubr.bf16.gmra.mrb[24].mxu0 %v1539_v42  ;;  %834 = vmatmul.mubr.bf16.gmra.mrb[24].mxu1 %v1540_v43 }
  0x60   : > { %777 = vmatprep.mubr.bf16.mxu0 %v1541_v44  ;;  %841 = vmatprep.mubr.bf16.mxu1 %v1543_v45 }
  0x67   : > { %778 = vmatmul.mubr.bf16.gmra.mrb[28].mxu0 %v1545_v46  ;;  %842 = vmatmul.mubr.bf16.gmra.mrb[28].mxu1 %v1546_v47 }
 0x102   : > { %v1314_v48 = vpop.f32.mrb[0].mxu0  ;;  %v1362_v49 = vpop.f32.mrb[0].mxu1 }
 0x103   : > { %v1315_v50 = vpop.f32.mrb[1].mxu0  ;;  %v1363_v52 = vpop.f32.mrb[1].mxu1 }
 0x104   : > { %v1316_v53 = vadd.f32 %v1315_v50, %v1314_v48  ;;  %v1364_v54 = vadd.f32 %v1363_v52, %v1362_v49  ;;  %v1317_v55 = vpop.f32.mrb[2].mxu0  ;;  %v1365_v56 = vpop.f32.mrb[2].mxu1 }
 0x105   : > { %v1318_v58 = vpop.f32.mrb[3].mxu0  ;;  %v1366_v59 = vpop.f32.mrb[3].mxu1 }
 0x106   : > { %v956_v60 = vmul.f32 %v1316_v53, %v1800_v51  ;;  %v972_v61 = vmul.f32 %v1364_v54, %v1800_v51  ;;  %v1319_v62 = vadd.f32 %v1318_v58, %v1317_v55  ;;  %v1367_v63 = vadd.f32 %v1366_v59, %v1365_v56 }
 0x108   : > { %v995_v0 = vadd.f32 %v1805_v57, %v956_v60  ;;  %v1011_v1 = vadd.f32 %v1805_v57, %v972_v61  ;;  %v957_v2 = vmul.f32 %v1319_v62, %v1800_v51  ;;  %v973_v3 = vmul.f32 %v1367_v63, %v1800_v51 }
 0x10a   : > { %v1027_v4 = vmax.f32 %v995_v0, 0.0  ;;  %v1043_v5 = vmax.f32 %v1011_v1, 0.0  ;;  %v996_v6 = vadd.f32 %v1805_v57, %v957_v2  ;;  %v1012_v7 = vadd.f32 %v1805_v57, %v973_v3  ;;  %v1320_v8 = vpop.f32.mrb[4].mxu0  ;;  %v1368_v9 = vpop.f32.mrb[4].mxu1 }
 0x10b   : > { %v1321_v10 = vpop.f32.mrb[5].mxu0  ;;  %v1369_v11 = vpop.f32.mrb[5].mxu1 }
 0x10c   : > { %1059 = vst [vmem:[%s1817_s14] sm:$0xff] %v1027_v4  ;;  %1075 = vst [vmem:[%s1817_s14 + $0x80] sm:$0xff] %v1043_v5  ;;  %v1028_v12 = vmax.f32 %v996_v6, 0.0  ;;  %v1044_v13 = vmax.f32 %v1012_v7, 0.0  ;;  %v1322_v14 = vadd.f32 %v1321_v10, %v1320_v8  ;;  %v1370_v15 = vadd.f32 %v1369_v11, %v1368_v9  ;;  %v1323_v16 = vpop.f32.mrb[6].mxu0  ;;  %v1371_v17 = vpop.f32.mrb[6].mxu1 }
 0x10d   : > { %v1324_v18 = vpop.f32.mrb[7].mxu0  ;;  %v1372_v19 = vpop.f32.mrb[7].mxu1 }
 0x10e   : > { %1060 = vst [vmem:[%s1817_s14 + $0x8] sm:$0xff] %v1028_v12  ;;  %1076 = vst [vmem:[%s1817_s14 + $0x88] sm:$0xff] %v1044_v13  ;;  %v958_v20 = vmul.f32 %v1322_v14, %v1800_v51  ;;  %v974_v21 = vmul.f32 %v1370_v15, %v1800_v51  ;;  %v1325_v22 = vadd.f32 %v1324_v18, %v1323_v16 }
 0x10f   : > { %v1373_v23 = vadd.f32 %v1372_v19, %v1371_v17 }
 0x110   : > { %v997_v24 = vadd.f32 %v1805_v57, %v958_v20  ;;  %v1013_v25 = vadd.f32 %v1805_v57, %v974_v21  ;;  %v959_v26 = vmul.f32 %v1325_v22, %v1800_v51 }
 0x111   : > { %v975_v27 = vmul.f32 %v1373_v23, %v1800_v51 }
 0x112   : > { %v1029_v28 = vmax.f32 %v997_v24, 0.0  ;;  %v1045_v29 = vmax.f32 %v1013_v25, 0.0  ;;  %v998_v30 = vadd.f32 %v1805_v57, %v959_v26  ;;  %v1326_v32 = vpop.f32.mrb[8].mxu0  ;;  %v1374_v33 = vpop.f32.mrb[8].mxu1 }
 0x113   : > { %v1014_v31 = vadd.f32 %v1805_v57, %v975_v27  ;;  %v1327_v34 = vpop.f32.mrb[9].mxu0  ;;  %v1375_v35 = vpop.f32.mrb[9].mxu1 }
 0x114   : > { %1061 = vst [vmem:[%s1817_s14 + $0x10] sm:$0xff] %v1029_v28  ;;  %1077 = vst [vmem:[%s1817_s14 + $0x90] sm:$0xff] %v1045_v29  ;;  %v1030_v36 = vmax.f32 %v998_v30, 0.0  ;;  %v1328_v38 = vadd.f32 %v1327_v34, %v1326_v32  ;;  %v1376_v39 = vadd.f32 %v1375_v35, %v1374_v33  ;;  %v1329_v40 = vpop.f32.mrb[10].mxu0  ;;  %v1377_v41 = vpop.f32.mrb[10].mxu1 }
 0x115   : > { %v1046_v37 = vmax.f32 %v1014_v31, 0.0  ;;  %v1330_v42 = vpop.f32.mrb[11].mxu0  ;;  %v1378_v43 = vpop.f32.mrb[11].mxu1 }
 0x116   : > { %1062 = vst [vmem:[%s1817_s14 + $0x18] sm:$0xff] %v1030_v36  ;;  %v960_v44 = vmul.f32 %v1328_v38, %v1800_v51  ;;  %v976_v45 = vmul.f32 %v1376_v39, %v1800_v51  ;;  %v1331_v46 = vadd.f32 %v1330_v42, %v1329_v40  ;;  %v1379_v47 = vadd.f32 %v1378_v43, %v1377_v41 }
 0x117   : > { %1078 = vst [vmem:[%s1817_s14 + $0x98] sm:$0xff] %v1046_v37 }
 0x118   : > { %v999_v48 = vadd.f32 %v1805_v57, %v960_v44  ;;  %v1015_v49 = vadd.f32 %v1805_v57, %v976_v45  ;;  %v961_v50 = vmul.f32 %v1331_v46, %v1800_v51  ;;  %v977_v52 = vmul.f32 %v1379_v47, %v1800_v51 }
 0x11a   : > { %v1031_v53 = vmax.f32 %v999_v48, 0.0  ;;  %v1047_v54 = vmax.f32 %v1015_v49, 0.0  ;;  %v1000_v55 = vadd.f32 %v1805_v57, %v961_v50  ;;  %v1016_v56 = vadd.f32 %v1805_v57, %v977_v52  ;;  %v1332_v58 = vpop.f32.mrb[12].mxu0  ;;  %v1380_v59 = vpop.f32.mrb[12].mxu1 }
 0x11b   : > { %v1333_v60 = vpop.f32.mrb[13].mxu0  ;;  %v1381_v61 = vpop.f32.mrb[13].mxu1 }
 0x11c   : > { %1063 = vst [vmem:[%s1817_s14 + $0x20] sm:$0xff] %v1031_v53  ;;  %1079 = vst [vmem:[%s1817_s14 + $0xa0] sm:$0xff] %v1047_v54  ;;  %v1032_v62 = vmax.f32 %v1000_v55, 0.0  ;;  %v1048_v63 = vmax.f32 %v1016_v56, 0.0  ;;  %v1334_v0 = vadd.f32 %v1333_v60, %v1332_v58  ;;  %v1382_v1 = vadd.f32 %v1381_v61, %v1380_v59  ;;  %v1335_v2 = vpop.f32.mrb[14].mxu0  ;;  %v1383_v3 = vpop.f32.mrb[14].mxu1 }
 0x11d   : > { %v1336_v4 = vpop.f32.mrb[15].mxu0  ;;  %v1384_v5 = vpop.f32.mrb[15].mxu1 }
 0x11e   : > { %1064 = vst [vmem:[%s1817_s14 + $0x28] sm:$0xff] %v1032_v62  ;;  %1080 = vst [vmem:[%s1817_s14 + $0xa8] sm:$0xff] %v1048_v63  ;;  %v962_v6 = vmul.f32 %v1334_v0, %v1800_v51  ;;  %v978_v7 = vmul.f32 %v1382_v1, %v1800_v51  ;;  %v1337_v8 = vadd.f32 %v1336_v4, %v1335_v2 }
 0x11f   : > { %v1385_v9 = vadd.f32 %v1384_v5, %v1383_v3 }
 0x120   : > { %v1001_v10 = vadd.f32 %v1805_v57, %v962_v6  ;;  %v1017_v11 = vadd.f32 %v1805_v57, %v978_v7  ;;  %v963_v12 = vmul.f32 %v1337_v8, %v1800_v51 }
 0x121   : > { %v979_v13 = vmul.f32 %v1385_v9, %v1800_v51 }
 0x122   : > { %v1033_v14 = vmax.f32 %v1001_v10, 0.0  ;;  %v1049_v15 = vmax.f32 %v1017_v11, 0.0  ;;  %v1002_v16 = vadd.f32 %v1805_v57, %v963_v12  ;;  %v1338_v18 = vpop.f32.mrb[16].mxu0  ;;  %v1386_v19 = vpop.f32.mrb[16].mxu1 }
 0x123   : > { %v1018_v17 = vadd.f32 %v1805_v57, %v979_v13  ;;  %v1339_v20 = vpop.f32.mrb[17].mxu0  ;;  %v1387_v21 = vpop.f32.mrb[17].mxu1 }
 0x124   : > { %1065 = vst [vmem:[%s1817_s14 + $0x30] sm:$0xff] %v1033_v14  ;;  %1081 = vst [vmem:[%s1817_s14 + $0xb0] sm:$0xff] %v1049_v15  ;;  %v1034_v22 = vmax.f32 %v1002_v16, 0.0  ;;  %v1340_v24 = vadd.f32 %v1339_v20, %v1338_v18  ;;  %v1388_v25 = vadd.f32 %v1387_v21, %v1386_v19  ;;  %v1341_v26 = vpop.f32.mrb[18].mxu0  ;;  %v1389_v27 = vpop.f32.mrb[18].mxu1 }
 0x125   : > { %v1050_v23 = vmax.f32 %v1018_v17, 0.0  ;;  %v1342_v28 = vpop.f32.mrb[19].mxu0  ;;  %v1390_v29 = vpop.f32.mrb[19].mxu1 }
 0x126   : > { %1066 = vst [vmem:[%s1817_s14 + $0x38] sm:$0xff] %v1034_v22  ;;  %v964_v30 = vmul.f32 %v1340_v24, %v1800_v51  ;;  %v980_v31 = vmul.f32 %v1388_v25, %v1800_v51  ;;  %v1343_v32 = vadd.f32 %v1342_v28, %v1341_v26  ;;  %v1391_v33 = vadd.f32 %v1390_v29, %v1389_v27 }
 0x127   : > { %1082 = vst [vmem:[%s1817_s14 + $0xb8] sm:$0xff] %v1050_v23 }
 0x128   : > { %v1003_v34 = vadd.f32 %v1805_v57, %v964_v30  ;;  %v1019_v35 = vadd.f32 %v1805_v57, %v980_v31  ;;  %v965_v36 = vmul.f32 %v1343_v32, %v1800_v51  ;;  %v981_v37 = vmul.f32 %v1391_v33, %v1800_v51 }
 0x12a   : > { %v1035_v38 = vmax.f32 %v1003_v34, 0.0  ;;  %v1051_v39 = vmax.f32 %v1019_v35, 0.0  ;;  %v1004_v40 = vadd.f32 %v1805_v57, %v965_v36  ;;  %v1020_v41 = vadd.f32 %v1805_v57, %v981_v37  ;;  %v1344_v42 = vpop.f32.mrb[20].mxu0  ;;  %v1392_v43 = vpop.f32.mrb[20].mxu1 }
 0x12b   : > { %v1345_v44 = vpop.f32.mrb[21].mxu0  ;;  %v1393_v45 = vpop.f32.mrb[21].mxu1 }
 0x12c   : > { %1067 = vst [vmem:[%s1817_s14 + $0x40] sm:$0xff] %v1035_v38  ;;  %1083 = vst [vmem:[%s1817_s14 + $0xc0] sm:$0xff] %v1051_v39  ;;  %v1036_v46 = vmax.f32 %v1004_v40, 0.0  ;;  %v1052_v47 = vmax.f32 %v1020_v41, 0.0  ;;  %v1346_v48 = vadd.f32 %v1345_v44, %v1344_v42  ;;  %v1394_v49 = vadd.f32 %v1393_v45, %v1392_v43  ;;  %v1347_v50 = vpop.f32.mrb[22].mxu0  ;;  %v1395_v52 = vpop.f32.mrb[22].mxu1 }
 0x12d   : > { %v1348_v53 = vpop.f32.mrb[23].mxu0  ;;  %v1396_v54 = vpop.f32.mrb[23].mxu1 }
 0x12e   : > { %1068 = vst [vmem:[%s1817_s14 + $0x48] sm:$0xff] %v1036_v46  ;;  %1084 = vst [vmem:[%s1817_s14 + $0xc8] sm:$0xff] %v1052_v47  ;;  %v966_v55 = vmul.f32 %v1346_v48, %v1800_v51  ;;  %v982_v56 = vmul.f32 %v1394_v49, %v1800_v51  ;;  %v1349_v58 = vadd.f32 %v1348_v53, %v1347_v50 }
 0x12f   : > { %v1397_v59 = vadd.f32 %v1396_v54, %v1395_v52 }
 0x130   : > { %v1005_v60 = vadd.f32 %v1805_v57, %v966_v55  ;;  %v1021_v61 = vadd.f32 %v1805_v57, %v982_v56  ;;  %v967_v62 = vmul.f32 %v1349_v58, %v1800_v51 }
 0x131   : > { %v983_v63 = vmul.f32 %v1397_v59, %v1800_v51 }
 0x132   : > { %v1037_v0 = vmax.f32 %v1005_v60, 0.0  ;;  %v1053_v1 = vmax.f32 %v1021_v61, 0.0  ;;  %v1006_v2 = vadd.f32 %v1805_v57, %v967_v62  ;;  %v1350_v4 = vpop.f32.mrb[24].mxu0  ;;  %v1398_v5 = vpop.f32.mrb[24].mxu1 }
 0x133   : > { %v1022_v3 = vadd.f32 %v1805_v57, %v983_v63  ;;  %v1351_v6 = vpop.f32.mrb[25].mxu0  ;;  %v1399_v7 = vpop.f32.mrb[25].mxu1 }
 0x134   : > { %1069 = vst [vmem:[%s1817_s14 + $0x50] sm:$0xff] %v1037_v0  ;;  %1085 = vst [vmem:[%s1817_s14 + $0xd0] sm:$0xff] %v1053_v1  ;;  %v1038_v8 = vmax.f32 %v1006_v2, 0.0  ;;  %v1352_v10 = vadd.f32 %v1351_v6, %v1350_v4  ;;  %v1400_v11 = vadd.f32 %v1399_v7, %v1398_v5  ;;  %v1353_v12 = vpop.f32.mrb[26].mxu0  ;;  %v1401_v13 = vpop.f32.mrb[26].mxu1 }
 0x135   : > { %v1054_v9 = vmax.f32 %v1022_v3, 0.0  ;;  %v1354_v14 = vpop.f32.mrb[27].mxu0  ;;  %v1402_v15 = vpop.f32.mrb[27].mxu1 }
 0x136   : > { %1070 = vst [vmem:[%s1817_s14 + $0x58] sm:$0xff] %v1038_v8  ;;  %v968_v16 = vmul.f32 %v1352_v10, %v1800_v51  ;;  %v984_v17 = vmul.f32 %v1400_v11, %v1800_v51  ;;  %v1355_v18 = vadd.f32 %v1354_v14, %v1353_v12  ;;  %v1403_v19 = vadd.f32 %v1402_v15, %v1401_v13 }
 0x137   : > { %1086 = vst [vmem:[%s1817_s14 + $0xd8] sm:$0xff] %v1054_v9 }
 0x138   : > { %v1007_v20 = vadd.f32 %v1805_v57, %v968_v16  ;;  %v1023_v21 = vadd.f32 %v1805_v57, %v984_v17  ;;  %v969_v22 = vmul.f32 %v1355_v18, %v1800_v51  ;;  %v985_v23 = vmul.f32 %v1403_v19, %v1800_v51 }
 0x13a   : > { %v1039_v24 = vmax.f32 %v1007_v20, 0.0  ;;  %v1055_v25 = vmax.f32 %v1023_v21, 0.0  ;;  %v1008_v26 = vadd.f32 %v1805_v57, %v969_v22  ;;  %v1024_v27 = vadd.f32 %v1805_v57, %v985_v23  ;;  %v1356_v28 = vpop.f32.mrb[28].mxu0  ;;  %v1404_v29 = vpop.f32.mrb[28].mxu1 }
 0x13b   : > { %v1357_v30 = vpop.f32.mrb[29].mxu0  ;;  %v1405_v31 = vpop.f32.mrb[29].mxu1 }
 0x13c   : > { %1071 = vst [vmem:[%s1817_s14 + $0x60] sm:$0xff] %v1039_v24  ;;  %1087 = vst [vmem:[%s1817_s14 + $0xe0] sm:$0xff] %v1055_v25  ;;  %v1040_v32 = vmax.f32 %v1008_v26, 0.0  ;;  %v1056_v33 = vmax.f32 %v1024_v27, 0.0  ;;  %v1358_v34 = vadd.f32 %v1357_v30, %v1356_v28  ;;  %v1406_v35 = vadd.f32 %v1405_v31, %v1404_v29  ;;  %v1359_v36 = vpop.f32.mrb[30].mxu0  ;;  %v1407_v37 = vpop.f32.mrb[30].mxu1 }
 0x13d   : > { %v1360_v38 = vpop.f32.mrb[31].mxu0  ;;  %v1408_v39 = vpop.f32.mrb[31].mxu1 }
 0x13e   : > { %1072 = vst [vmem:[%s1817_s14 + $0x68] sm:$0xff] %v1040_v32  ;;  %1088 = vst [vmem:[%s1817_s14 + $0xe8] sm:$0xff] %v1056_v33  ;;  %v970_v40 = vmul.f32 %v1358_v34, %v1800_v51  ;;  %v986_v41 = vmul.f32 %v1406_v35, %v1800_v51  ;;  %v1361_v42 = vadd.f32 %v1360_v38, %v1359_v36 }
 0x13f   : > { %v1409_v43 = vadd.f32 %v1408_v39, %v1407_v37 }
 0x140   : > { %v1009_v44 = vadd.f32 %v1805_v57, %v970_v40  ;;  %v1025_v45 = vadd.f32 %v1805_v57, %v986_v41  ;;  %v971_v46 = vmul.f32 %v1361_v42, %v1800_v51 }
 0x141   : > { %v987_v47 = vmul.f32 %v1409_v43, %v1800_v51 }
 0x142   : > { %v1041_v48 = vmax.f32 %v1009_v44, 0.0  ;;  %v1057_v49 = vmax.f32 %v1025_v45, 0.0  ;;  %v1010_v50 = vadd.f32 %v1805_v57, %v971_v46 }
 0x143   : > { %v1026_v52 = vadd.f32 %v1805_v57, %v987_v47 }
 0x144   : > { %1073 = vst [vmem:[%s1817_s14 + $0x70] sm:$0xff] %v1041_v48  ;;  %1089 = vst [vmem:[%s1817_s14 + $0xf0] sm:$0xff] %v1057_v49  ;;  %v1042_v51 = vmax.f32 %v1010_v50, 0.0 }
 0x145   : > { %v1058_v53 = vmax.f32 %v1026_v52, 0.0 }
 0x146   : > { %1074 = vst [vmem:[%s1817_s14 + $0x78] sm:$0xff] %v1042_v51 }
 0x147   : > { %1090 = vst [vmem:[%s1817_s14 + $0xf8] sm:$0xff] %v1058_v53 }
 0x148   : > { %1560 = shalt.err (!%p1557_p5)
}
 0x149   : > { %s1561_s9 = scalar_lea.hbm %s1908_s29, 4096  ;;  %s1565_s5 = scalar_lea.hbm %s1968_s4, 32768 }
 0x14a   : > { %p1562_p6 = scmp.ne.s32.totalorder %s1908_s29, %s1561_s9  ;;  %p1566_p10 = scmp.lt.u32.totalorder %s1908_s29, %s1968_s4 }
 0x14b   : > { %p1567_p11 = scmp.lt.u32.totalorder %s1565_s5, %s1561_s9  ;;  %p1569_p13 = scmp.lt.u32.totalorder %s1561_s9, %s1908_s29 }
 0x14c   : > { %p1563_p7 = pnand %p1562_p6, %p1695_p4 }
 0x14d   : > { %p1568_p12 = por %p1567_p11, %p1566_p10 }
 0x14e   : > { %p1564_p9 = pneg %p1563_p7 }
 0x14f   : > { %p1570_p0 = por %p1569_p13, %p1568_p12 }
 0x151   : > { %p1571_p1 = pnand %p1570_p0, %p1564_p9 }
 0x153   : > { %1574 = shalt.err (!%p1571_p1)
}
 0x154   : > { %s1628_s14 = smov 128   ;;  %s1629_s21 = smov 8  }
 0x155   : > { %1426 = dma.vmem_to_hbm [thread:$0]  (%p1695_p4), %s1910_s22, 4096, %s1908_s29, %s1918_s18, %s1628_s14, %s1628_s14, %s1629_s21  }
 0x156 PF: > { %p1432_p2 = scmp.ge.s32.totalorder %s1625_s20, 2  ;;  %s1121_s24 = sand.u32 1, %s1605_s15  }
 0x157   : > { %s1122_s26 = scalar_lea.sflag [#allocation4], %s1121_s24 }
 0x158   : > { %p1429_p3 = pnand %p1432_p2, %p1702_p8 }
 0x15a   : > { %1600 = dma.done.wait (!%p1429_p3), %s1122_s26, 4096  }
 0x15b   : > { %1602 = vsyncadd (!%p1429_p3), %s1122_s26, 4294963200  ;;  %s17_s20 = sadd.s32 1, %s1625_s20   ;;  %s1971_s15 = smov %s1609_s16 }
 0x15c   : > { %p14_p5 = scmp.ge.s32.totalorder %s17_s20, 10   ;;  %s1972_s16 = smov %s1613_s17 }
 0x15d   : > { %s1973_s17 = smov %s1708_s28  ;;  %s1974_s18 = smov %s1621_s19 }
 0x15e   : > { %s1975_s19 = smov %s1977_s23  ;;  %16 = sbr.rel (!%p14_p5) target bundleno = 4 (0x4), region = 88 }
 0x165   :  { %1127 = vsyncpa [#allocation4], 1 }
 0x166   :  { %1129 = vsyncpa [#allocation4 + $0x1], 1 }

</bundles_post_ra>
